<compile_context>
chip_gen: v5e
topology: v5e:2x2
jax: 0.10.0
libtpu: 0.0.40
codegen_flags: <defaults>
</compile_context>

<pallas_src>
import jax
import jax.numpy as jnp
from jax import lax
from jax.experimental import pallas as pl
from jax.experimental.pallas import tpu as pltpu


def _make_kernel(n_total: int, tile_n: int):
    inv_n = 1.0 / float(n_total)

    def kernel(fvec_ref, labels_ref, loss_ref, pred_ref, acc_ref):
        pid = pl.program_id(0)

        @pl.when(pid == 0)
        def _init():
            acc_ref[0] = jnp.float32(0.0)

        # proxy == eye(C)  =>  Dist = fvec @ eye.T = fvec  (no MXU round-trip)
        dist = fvec_ref[...].astype(jnp.float32)                            # (TN, C)

        # pred = argmax over classes (first-max index; torch tie-break may differ)
        pred = jnp.argmax(dist, axis=1).astype(jnp.int32)                   # (TN,)
        pred_ref[...] = pred[None, :]                                       # lane-dense (1, TN)

        # -log_softmax picked at label:  -logp[i, y] = m_i + lse_i - dist[i, y]
        m = jnp.max(dist, axis=1, keepdims=True)                            # (TN, 1)
        lse = jnp.log(jnp.sum(jnp.exp(dist - m), axis=1, keepdims=True))    # (TN, 1)

        labels = labels_ref[...]                                            # (TN, 1) int32
        col_ids = lax.broadcasted_iota(jnp.int32, dist.shape, 1)            # (TN, C)
        onehot = (col_ids == labels).astype(jnp.float32)
        dist_y = jnp.sum(dist * onehot, axis=1, keepdims=True)              # (TN, 1)
        # NOTE: out-of-range labels silently contribute (m + lse) here instead
        # of erroring like torch gather; inputs are assumed in-range.

        # Mask rows added by batch padding (global row index >= n_total).
        row_ids = lax.broadcasted_iota(jnp.int32, (tile_n, 1), 0) + pid * tile_n
        valid = (row_ids < n_total).astype(jnp.float32)

        acc_ref[0] += jnp.sum((m + lse - dist_y) * valid)

        @pl.when(pid == pl.num_programs(0) - 1)
        def _finalize():
            loss_ref[0, 0] = acc_ref[0] * inv_n

    return kernel


def proxy_static_loss(fvec, labels):
    """fvec: (N, C) float with C == proxy_num == embed_size, labels: (N,) int.
    Returns (loss scalar f32, pred (N,) int32)."""
    n, c = fvec.shape

    # Tile over the batch dimension.
    if n <= 512:
        n_pad = -(-n // 8) * 8   # round up to a sublane multiple
        tn = n_pad               # single tile
    else:
        tn = 512                 # multiple of 128 -> lane-dense, near HBM roofline
        n_pad = -(-n // tn) * tn

    labels2d = labels.astype(jnp.int32).reshape(n, 1)
    if n_pad != n:
        fvec = jnp.pad(fvec, ((0, n_pad - n), (0, 0)))
        labels2d = jnp.pad(labels2d, ((0, n_pad - n), (0, 0)))

    loss, pred = pl.pallas_call(
        _make_kernel(n, tn),
        out_shape=(
            jax.ShapeDtypeStruct((1, 1), jnp.float32),      # loss (scalar, SMEM)
            jax.ShapeDtypeStruct((1, n_pad), jnp.int32),    # pred (lane-dense)
        ),
        grid_spec=pltpu.PrefetchScalarGridSpec(
            num_scalar_prefetch=0,
            grid=(n_pad // tn,),
            in_specs=[
                pl.BlockSpec((tn, c), lambda i: (i, 0)),
                pl.BlockSpec((tn, 1), lambda i: (i, 0)),
            ],
            out_specs=(
                pl.BlockSpec(memory_space=pltpu.MemorySpace.SMEM),
                pl.BlockSpec((1, tn), lambda i: (0, i)),
            ),
            scratch_shapes=[pltpu.SMEM((1,), jnp.float32)],
        ),
        compiler_params=pltpu.CompilerParams(
            dimension_semantics=("arbitrary",),
        ),
    )(fvec, labels2d)

    return loss[0, 0], pred[0, :n]


if __name__ == "__main__":
    # Small shapes implied by the module: fvec.mm(eye(proxy_num).t()) requires
    # embed_size == proxy_num.
    N = 8            # batch
    PROXY_NUM = 32   # proxy_num == embed_size

    key = jax.random.PRNGKey(0)
    k1, k2 = jax.random.split(key)
    fvec = jax.random.normal(k1, (N, PROXY_NUM), dtype=jnp.float32)
    fLvec = jax.random.randint(k2, (N,), 0, PROXY_NUM, dtype=jnp.int32)

    loss, pred = proxy_static_loss(fvec, fLvec)
    jax.block_until_ready((loss, pred))

    # Plain-JAX reference (proxy == identity => Dist == fvec).
    dist_ref = fvec
    logp_ref = jax.nn.log_softmax(dist_ref, axis=1)
    loss_ref = jnp.mean(-logp_ref[jnp.arange(N), fLvec])
    pred_ref = jnp.argmax(dist_ref, axis=1).astype(jnp.int32)
    assert jnp.allclose(loss, loss_ref, atol=1e-5), (loss, loss_ref)
    assert jnp.array_equal(pred, pred_ref), (pred, pred_ref)

    print("KERNEL_OK")
</pallas_src>

<mosaic_0001>
module attributes {stable_mosaic.version = 11 : i64} {
  func.func @kernel(%arg0: i32, %arg1: memref<8x32xf32, #tpu.memory_space<vmem>>, %arg2: memref<8x1xi32, #tpu.memory_space<vmem>>, %arg3: memref<1x1xf32, #tpu.memory_space<smem>>, %arg4: memref<1x8xi32, #tpu.memory_space<vmem>>, %arg5: memref<1xf32, #tpu.memory_space<smem>>) attributes {dimension_semantics = [#tpu.dimension_semantics<arbitrary>], iteration_bounds = array<i64: 1>, scalar_prefetch = 0 : i64, scratch_operands = 1 : i64, tpu.core_type = #tpu.core_type<tc>, window_params = [{transform_indices = @transform_0, window_bounds = array<i64: 8, 32>}, {transform_indices = @transform_1, window_bounds = array<i64: 8, 1>}, {transform_indices = @transform_2, window_bounds = array<i64: 1, 1>}, {transform_indices = @transform_3, window_bounds = array<i64: 1, 8>}]} {
    %c0_i32 = arith.constant 0 : i32
    %0 = arith.cmpi eq, %arg0, %c0_i32 : i32
    %1 = arith.extui %0 : i1 to i32
    %c0_i32_0 = arith.constant 0 : i32
    %2 = arith.cmpi ne, %1, %c0_i32_0 : i32
    scf.if %2 {
      %cst_14 = arith.constant 0.000000e+00 : f32
      %c0_15 = arith.constant 0 : index
      %45 = memref.load %arg5[%c0_15] : memref<1xf32, #tpu.memory_space<smem>>
      memref.store %cst_14, %arg5[%c0_15] : memref<1xf32, #tpu.memory_space<smem>>
    } else {
    }
    %c0 = arith.constant 0 : index
    %c0_1 = arith.constant 0 : index
    %3 = vector.load %arg1[%c0, %c0_1] : memref<8x32xf32, #tpu.memory_space<vmem>>, vector<8x32xf32>
    %4 = tpu.reduce_index %3 {axis = 1 : i32, kind = #tpu.reduction_kind<arg_max>} : vector<8x32xf32> -> vector<8xi32>
    %5 = vector.shape_cast %4 : vector<8xi32> to vector<1x8xi32>
    %c0_2 = arith.constant 0 : index
    %c0_3 = arith.constant 0 : index
    %6 = vector.load %arg4[%c0_2, %c0_3] : memref<1x8xi32, #tpu.memory_space<vmem>>, vector<1x8xi32>
    tpu.vector_store %arg4[%c0_2, %c0_3], %5 {strides = array<i32>} : memref<1x8xi32, #tpu.memory_space<vmem>>, vector<1x8xi32>,
    %cst = arith.constant dense<0xFF800000> : vector<8xf32>
    %7 = vector.multi_reduction <maximumf>, %3, %cst [1] : vector<8x32xf32> to vector<8xf32>
    %8 = vector.shape_cast %7 : vector<8xf32> to vector<8x1xf32>
    %9 = vector.broadcast %8 : vector<8x1xf32> to vector<8x32xf32>
    %10 = arith.subf %3, %9 : vector<8x32xf32>
    %11 = math.exp %10 : vector<8x32xf32>
    %cst_4 = arith.constant dense<0.000000e+00> : vector<8xf32>
    %12 = vector.multi_reduction <add>, %11, %cst_4 [1] : vector<8x32xf32> to vector<8xf32>
    %13 = vector.shape_cast %12 : vector<8xf32> to vector<8x1xf32>
    %14 = math.log %13 : vector<8x1xf32>
    %c0_5 = arith.constant 0 : index
    %c0_6 = arith.constant 0 : index
    %15 = vector.load %arg2[%c0_5, %c0_6] : memref<8x1xi32, #tpu.memory_space<vmem>>, vector<8x1xi32>
    %16 = tpu.iota {dimensions = array<i32: 1>} : vector<8x32xi32>
    %17 = vector.broadcast %15 : vector<8x1xi32> to vector<8x32xi32>
    %18 = arith.cmpi eq, %16, %17 : vector<8x32xi32>
    %19 = arith.extui %18 : vector<8x32xi1> to vector<8x32xi32>
    %20 = arith.sitofp %19 : vector<8x32xi32> to vector<8x32xf32>
    %21 = arith.mulf %3, %20 : vector<8x32xf32>
    %cst_7 = arith.constant dense<0.000000e+00> : vector<8xf32>
    %22 = vector.multi_reduction <add>, %21, %cst_7 [1] : vector<8x32xf32> to vector<8xf32>
    %23 = vector.shape_cast %22 : vector<8xf32> to vector<8x1xf32>
    %24 = tpu.iota {dimensions = array<i32: 0>} : vector<8x1xi32>
    %c8_i32 = arith.constant 8 : i32
    %25 = arith.muli %arg0, %c8_i32 : i32
    %26 = vector.broadcast %25 : i32 to vector<8x1xi32>
    %27 = arith.addi %24, %26 : vector<8x1xi32>
    %c8_i32_8 = arith.constant 8 : i32
    %28 = vector.broadcast %c8_i32_8 : i32 to vector<8x1xi32>
    %29 = arith.cmpi slt, %27, %28 : vector<8x1xi32>
    %30 = arith.extui %29 : vector<8x1xi1> to vector<8x1xi32>
    %31 = arith.sitofp %30 : vector<8x1xi32> to vector<8x1xf32>
    %c0_9 = arith.constant 0 : index
    %32 = memref.load %arg5[%c0_9] : memref<1xf32, #tpu.memory_space<smem>>
    %33 = arith.addf %8, %14 : vector<8x1xf32>
    %34 = arith.subf %33, %23 : vector<8x1xf32>
    %35 = arith.mulf %34, %31 : vector<8x1xf32>
    %36 = vector.shape_cast %35 : vector<8x1xf32> to vector<1x8x1xf32>
    %cst_10 = arith.constant dense<0.000000e+00> : vector<1xf32>
    %37 = vector.multi_reduction <add>, %36, %cst_10 [1, 2] : vector<1x8x1xf32> to vector<1xf32>
    %38 = vector.shape_cast %37 : vector<1xf32> to vector<1x1x1xf32>
    %39 = vector.extract %38[0, 0, 0] : f32 from vector<1x1x1xf32>
    %40 = arith.addf %32, %39 : f32
    %c0_11 = arith.constant 0 : index
    %41 = memref.load %arg5[%c0_11] : memref<1xf32, #tpu.memory_space<smem>>
    memref.store %40, %arg5[%c0_11] : memref<1xf32, #tpu.memory_space<smem>>
    %c0_i32_12 = arith.constant 0 : i32
    %42 = arith.cmpi eq, %arg0, %c0_i32_12 : i32
    %43 = arith.extui %42 : i1 to i32
    %c0_i32_13 = arith.constant 0 : i32
    %44 = arith.cmpi ne, %43, %c0_i32_13 : i32
    scf.if %44 {
      %c0_14 = arith.constant 0 : index
      %45 = memref.load %arg5[%c0_14] : memref<1xf32, #tpu.memory_space<smem>>
      %cst_15 = arith.constant 1.250000e-01 : f32
      %46 = arith.mulf %45, %cst_15 : f32
      %c0_16 = arith.constant 0 : index
      %c0_17 = arith.constant 0 : index
      %47 = memref.load %arg3[%c0_16, %c0_17] : memref<1x1xf32, #tpu.memory_space<smem>>
      memref.store %46, %arg3[%c0_16, %c0_17] : memref<1x1xf32, #tpu.memory_space<smem>>
    } else {
    }
    return
  }
  func.func @transform_0(%arg0: i32) -> (i32, i32) {
    %c0_i32 = arith.constant 0 : i32
    %c0_i32_0 = arith.constant 0 : i32
    return %arg0, %c0_i32 : i32, i32
  }
  func.func @transform_1(%arg0: i32) -> (i32, i32) {
    %c0_i32 = arith.constant 0 : i32
    %c0_i32_0 = arith.constant 0 : i32
    return %arg0, %c0_i32 : i32, i32
  }
  func.func @transform_2(%arg0: i32) -> (i32, i32) {
    %c0_i32 = arith.constant 0 : i32
    %c0_i32_0 = arith.constant 0 : i32
    %c0_i32_1 = arith.constant 0 : i32
    return %c0_i32, %c0_i32_0 : i32, i32
  }
  func.func @transform_3(%arg0: i32) -> (i32, i32) {
    %c0_i32 = arith.constant 0 : i32
    %c0_i32_0 = arith.constant 0 : i32
    return %c0_i32, %arg0 : i32, i32
  }
}

</mosaic_0001>

<bundles_post_ra>
// kernel: tpu_custom_call.1
= control target key start
LH: loop header
LB: loop body
LE: loop exit
PB: predicated region body
PF: predicated region fallthrough
CT: control target
= control target key end

     0   :  { %9 = vsyncpa [#allocation5], 0  ;;  %vm22_vm0 = vcmask 261120   ;;  %s207_s0 = inlined_call_operand.vmem [shape: f32[8,32], index: 0, kind: input, shape index: {}]   ;;  %s208_s1 = inlined_call_operand.vmem [shape: s32[8,1], index: 1, kind: input, shape index: {}]   ;;  %s209_s2 = inlined_call_operand.hbm [shape: f32[1,1], index: 2, kind: output, shape index: {0}]   ;;  %s210_s3 = inlined_call_operand.hbm [shape: s32[1,8], index: 3, kind: output, shape index: {1}]  }
   0x1   :  { %v21_v0 = vld [vmem:[%s207_s0] sm:$0xff] }
   0x2   :  { %10 = vsyncpa [#allocation4], 0  ;;  %v23_v1 = vsel %vm22_vm0, %v21_v0, -inf  ;;  %v168_v2 = vmov 0   ;;  %v41_v3 = vld [vmem:[%s208_s1] sm:$0xff]  ;;  %v26_v9 = vlaneseq  ;;  %v169_v12 = vmov 0.0  }
   0x3   :  { %123 = vset.pattern.permute.xlu0 %v168_v2  ;;  %vm64_vm2 = vcmask 7168   ;;  %s170_s0 = smov [#allocation6]   ;;  %s101_s18 = sshll.u32 %s210_s3, 4  ;;  %vm29_vm3 = vcmask 57344   ;;  %s102_s18 = int_to_ptr.hbm [resolvable:$true] %s101_s18 }
   0x4   :  { %31 = vmax.xlane.f32.xlu0 %v23_v1  ;;  %v27_v10 = vand.u32 127, %v26_v9  ;;  %s99_s1 = sshll.u32 %s170_s0, 4  ;;  %s90_s21 = sshll.u32 %s209_s2, 4  ;;  %s100_s1 = int_to_ptr.vmem [resolvable:$true] %s99_s1  ;;  %s91_s21 = int_to_ptr.hbm [resolvable:$true] %s90_s21 }
   0x5   :  { %s171_s24 = smov [#allocation3]  }
  0x18   :  { %43 = vperm.xlu0 %123, %v41_v3  }
  0x77   :  { %v32_v4 = vpop.xlane.xlu0 %31 }
  0x78   :  { %v33_v5 = vsub.f32 %v21_v0, %v32_v4 }
  0x7a   :  { %v34_v6 = vmul.f32 1.442695, %v33_v5 }
  0x7c   :  { %124 = vpow2.f32 %v34_v6 }
  0x82   :  { %v125_v7 = vpop.eup %124 }
  0x83   :  { %v36_v8 = vsel %vm22_vm0, %v125_v7, 0.0 }
  0x84   :  { %37 = vadd.xlane.f32.xlu1 %v36_v8 }
  0x8a   :  { %v44_v11 = vpop.permute.xlu0 %43 }
  0x8b   :  { %vm45_vm1 = vcmp.eq.s32.totalorder %v27_v10, %v44_v11 }
  0x8c   :  { %v116_v13 = vsel %vm45_vm1, 1.0, %v169_v12 }
  0x8d   :  { %v48_v14 = vmul.f32 %v116_v13, %v21_v0 }
  0x8f   :  { %v49_v15 = vsel %vm22_vm0, %v48_v14, 0.0 }
  0x90   :  { %50 = vadd.xlane.f32.xlu1 %v49_v15 }
  0xf7   :  { %v38_v16 = vpop.xlane.xlu1 %37 }
  0xf8   :  { %126 = vlog2.f32 %v38_v16 }
  0xfe   :  { %v127_v17 = vpop.eup %126 }
  0xff   :  { %v40_v18 = vmul.f32 0.6931472, %v127_v17 }
 0x101   :  { %v61_v19 = vadd.f32 %v40_v18, %v32_v4 }
 0x103   :  { %v51_v20 = vpop.xlane.xlu1 %50 }
 0x104   :  { %v62_v21 = vsub.f32 %v61_v19, %v51_v20 }
 0x106   :  { %v65_v22 = vsel %vm64_vm2, %v62_v21, 0.0 }
 0x107   :  { %66 = vadd.xlane.f32.xlu2 %v65_v22 }
 0x10f   :  { %24 = vmax.index.xlane.f32.xlu2 %v23_v1 }
 0x17a   :  { %v67_v23 = vpop.xlane.xlu2 %66 }
 0x17b   :  { %v68_v24 = vrot.slane %v67_v23, 4 }
 0x17d   :  { %v69_v25 = vadd.f32 %v68_v24, %v67_v23 }
 0x17f   :  { %v70_v26 = vrot.slane %v69_v25, 2 }
 0x181   :  { %v71_v27 = vadd.f32 %v70_v26, %v69_v25 }
 0x182   :  { %v25_v30 = vpop.xlane.xlu2 %24 }
 0x183   :  { %v72_v28 = vrot.slane %v71_v27, 1  ;;  %v28_v31 = vperm.slane %v25_v30, %v27_v10 }
 0x185   :  { %v73_v29 = vadd.f32 %v72_v28, %v71_v27  ;;  %30 = vst.msk [vmem:[#allocation6] sm:$0x1] %vm29_vm3, %v28_v31 }
 0x186   :  { %104 = dma.vmem_to_hbm [thread:$0]  %s100_s1, 16, %s102_s18, [#allocation4]  }
 0x187   :  { %117 = vpush %v73_v29 }
 0x1b8   :  { %s118_s22 = spop %117 }
 0x1b9   :  { %s82_s23 = smul.f32 0.125, %s118_s22 }
 0x1bb   :  { %84 = sst [smem:[#allocation3]] %s82_s23 }
 0x1bc   :  { %93 = dma.smem_to_hbm %s171_s24, 16, %s91_s21, [#allocation5]  }
 0x1bd   :  { %164 = dma.done.wait [#allocation5], 16  }
 0x1be   :  { %165 = vsyncadd [#allocation5], 4294967280 }
 0x1bf   :  { %166 = dma.done.wait [#allocation4], 16  }
 0x1c0   :  { %167 = vsyncadd [#allocation4], 4294967280 }
 0x1c1   :  { %113 = sfence }
 0x1c2   :  { %114 = vsyncpa [#allocation4], 1 }
 0x1c3   :  { %115 = vsyncpa [#allocation5], 1 }

</bundles_post_ra>
